<compile_context>
chip_gen: v6e
topology: v6e:2x2x1
jax: 0.10.0
libtpu: 0.0.40
codegen_flags: <defaults>
</compile_context>

<pallas_src>
import jax
import jax.numpy as jnp
from jax.experimental import pallas as pl
from jax.experimental.pallas import tpu as pltpu

LANE = 128                 # vreg lane width / MXU alignment
EPS = 1e-5                 # nn.BatchNorm1d default eps
SMALL_HP = 512             # fast-path thresholds (padded dims)
SMALL_OP = 512
SMALL_FP = 2048
VMEM_LIMIT = 32 * 1024 * 1024   # scoped VMEM budget, safe on v5e/v6e/v7x


def _round_up(n, m):
    return ((n + m - 1) // m) * m


def _pad2d(a, rows, cols):
    return jnp.pad(a, ((0, rows - a.shape[0]), (0, cols - a.shape[1])))


def _pick_tile(padded_dim, pref=256):
    """Largest of {pref, 128} dividing the 128-padded dim (256 fills the
    v6e/v7x 256x256 MXU; 128 still fine for v5e's 128x128 MXU)."""
    return pref if padded_dim % pref == 0 else LANE


# ----------------------------------------------------------------------------
# Small-shape fast path: one block, no grid, no pl.when.
# ----------------------------------------------------------------------------
def _ffnn_small_kernel(x_ref, w1_ref, b1_ref, gamma_ref, beta_ref,
                       w2_ref, b2_ref, o_ref):
    # linear1: bf16 MXU operands, f32 accumulation
    z = jnp.dot(x_ref[...], w1_ref[...], preferred_element_type=jnp.float32)
    z = z + b1_ref[...]
    # BatchNorm1d (training mode), two-pass f32 batch statistics
    mean = jnp.mean(z, axis=0, keepdims=True)
    var = jnp.mean((z - mean) ** 2, axis=0, keepdims=True)
    zn = (z - mean) * jax.lax.rsqrt(var + EPS) * gamma_ref[...] + beta_ref[...]
    a = jnp.maximum(zn, 0.0)
    # linear2
    out = jnp.dot(a.astype(jnp.bfloat16), w2_ref[...],
                  preferred_element_type=jnp.float32) + b2_ref[...]
    o_ref[...] = out.astype(o_ref.dtype)


# ----------------------------------------------------------------------------
# General path, stage 1: a = ReLU(BatchNorm(x @ W1 + b1)), tiled over H.
# BN couples only across the batch (whole batch lives in every block), so each
# H tile is independent -> "parallel" axis, W1 streamed exactly once.
# ----------------------------------------------------------------------------
def _act_kernel(x_ref, w1_ref, b1_ref, gamma_ref, beta_ref, a_ref):
    z = jnp.dot(x_ref[...], w1_ref[...], preferred_element_type=jnp.float32)
    z = z + b1_ref[...]
    mean = jnp.mean(z, axis=0, keepdims=True)
    var = jnp.mean((z - mean) ** 2, axis=0, keepdims=True)
    zn = (z - mean) * jax.lax.rsqrt(var + EPS) * gamma_ref[...] + beta_ref[...]
    a_ref[...] = jnp.maximum(zn, 0.0).astype(a_ref.dtype)


# ----------------------------------------------------------------------------
# General path, stage 2: out = a @ W2 + b2, grid (O parallel, H reduction
# last).  Accumulate directly into the resident f32 output block.
# ----------------------------------------------------------------------------
def _linear2_kernel(a_ref, w2_ref, b2_ref, o_ref):
    h = pl.program_id(1)

    @pl.when(h == 0)
    def _init():
        o_ref[...] = jnp.zeros_like(o_ref)

    o_ref[...] += jnp.dot(a_ref[...], w2_ref[...],
                          preferred_element_type=jnp.float32)

    @pl.when(h == pl.num_programs(1) - 1)
    def _finalize():
        o_ref[...] += b2_ref[...]


def ffnn_forward(x, w1, b1, gamma, beta, w2, b2):
    """x: (B, F); w1: (F, H); b1/gamma/beta: (1, H); w2: (H, O); b2: (1, O)."""
    B, F = x.shape
    H = w1.shape[1]
    O = w2.shape[1]

    # Pad lane dims to 128 (lane-dense vregs / aligned MXU tiles).  The batch
    # dim is NOT padded: BN statistics must run over exactly the real batch.
    Fp = _round_up(F, LANE)
    Hp = _round_up(H, LANE)
    Op = _round_up(O, LANE)

    # bf16 matmul operands (half the HBM->VMEM DMA bytes, MXU-native);
    # bias / BN params stay f32.
    x_p = _pad2d(x, B, Fp).astype(jnp.bfloat16)
    w1_p = _pad2d(w1, Fp, Hp).astype(jnp.bfloat16)
    w2_p = _pad2d(w2, Hp, Op).astype(jnp.bfloat16)
    b1_p = _pad2d(b1, 1, Hp)
    g_p = _pad2d(gamma, 1, Hp)
    bt_p = _pad2d(beta, 1, Hp)
    b2_p = _pad2d(b2, 1, Op)
    # Padded hidden columns: z == 0 exactly -> mean = var = 0, padded
    # gamma/beta are 0 -> normalized value 0 -> ReLU 0, and their W2 rows are
    # zero.  Padded F rows of W1 and padded O columns of W2/b2 are zero too,
    # so padding contributes nothing to the real output.

    if Hp <= SMALL_HP and Op <= SMALL_OP and Fp <= SMALL_FP:
        # ---------------- small-shape fast path: single block ----------------
        out_p = pl.pallas_call(
            _ffnn_small_kernel,
            out_shape=jax.ShapeDtypeStruct((B, Op), jnp.float32),
        )(x_p, w1_p, b1_p, g_p, bt_p, w2_p, b2_p)
        return out_p[:, :O]

    # ---------------------- general path: two pallas_calls -------------------
    tile_h = _pick_tile(Hp)
    tile_o = _pick_tile(Op)
    n_h = Hp // tile_h
    n_o = Op // tile_o

    # Stage 1: activations, tiled over H ("parallel" -> megacore shards H).
    # TODO(synk): for very large F (x + double-buffered W1 K-slab exceeding
    # ~half of scoped VMEM) add an F reduction axis for linear1.
    a_act = pl.pallas_call(
        _act_kernel,
        out_shape=jax.ShapeDtypeStruct((B, Hp), jnp.bfloat16),
        grid_spec=pltpu.PrefetchScalarGridSpec(
            num_scalar_prefetch=0,
            grid=(n_h,),
            in_specs=[
                pl.BlockSpec((B, Fp), lambda h: (0, 0)),        # x (resident)
                pl.BlockSpec((Fp, tile_h), lambda h: (0, h)),   # W1 tile
                pl.BlockSpec((1, tile_h), lambda h: (0, h)),    # b1 tile
                pl.BlockSpec((1, tile_h), lambda h: (0, h)),    # gamma tile
                pl.BlockSpec((1, tile_h), lambda h: (0, h)),    # beta tile
            ],
            out_specs=pl.BlockSpec((B, tile_h), lambda h: (0, h)),
        ),
        compiler_params=pltpu.CompilerParams(
            dimension_semantics=("parallel",),
            vmem_limit_bytes=VMEM_LIMIT,
        ),
    )(x_p, w1_p, b1_p, g_p, bt_p)

    # Stage 2: out = a @ W2 + b2.  H is the reduction axis (last, "arbitrary");
    # the output block is resident across it and accumulated in f32 in place.
    out_p = pl.pallas_call(
        _linear2_kernel,
        out_shape=jax.ShapeDtypeStruct((B, Op), jnp.float32),
        grid_spec=pltpu.PrefetchScalarGridSpec(
            num_scalar_prefetch=0,
            grid=(n_o, n_h),
            in_specs=[
                pl.BlockSpec((B, tile_h), lambda o, h: (0, h)),       # a tile
                pl.BlockSpec((tile_h, tile_o), lambda o, h: (h, o)),  # W2 tile
                pl.BlockSpec((1, tile_o), lambda o, h: (0, o)),       # b2 tile
            ],
            out_specs=pl.BlockSpec((B, tile_o), lambda o, h: (0, o)),
        ),
        compiler_params=pltpu.CompilerParams(
            dimension_semantics=("parallel", "arbitrary"),
            vmem_limit_bytes=VMEM_LIMIT,
        ),
    )(a_act, w2_p, b2_p)

    return out_p[:, :O]


def init_params(key, input_shape, hidden_units, output_shape):
    """Deterministic init matching the PyTorch module's parameter shapes."""
    k1, k2, k3, k4 = jax.random.split(key, 4)
    lim1 = 1.0 / jnp.sqrt(float(input_shape))
    lim2 = 1.0 / jnp.sqrt(float(hidden_units))
    w1 = jax.random.uniform(k1, (input_shape, hidden_units), jnp.float32, -lim1, lim1)
    b1 = jax.random.uniform(k2, (1, hidden_units), jnp.float32, -lim1, lim1)
    w2 = jax.random.uniform(k3, (hidden_units, output_shape), jnp.float32, -lim2, lim2)
    b2 = jax.random.uniform(k4, (1, output_shape), jnp.float32, -lim2, lim2)
    gamma = jnp.ones((1, hidden_units), jnp.float32)    # BatchNorm1d init
    beta = jnp.zeros((1, hidden_units), jnp.float32)
    return w1, b1, gamma, beta, w2, b2


def reference_forward(x, w1, b1, gamma, beta, w2, b2):
    """Pure-f32 reference matching the PyTorch module in train() mode."""
    z = x @ w1 + b1
    mean = jnp.mean(z, axis=0, keepdims=True)
    var = jnp.mean((z - mean) ** 2, axis=0, keepdims=True)
    z_normed = (z - mean) / jnp.sqrt(var + EPS) * gamma + beta
    a = jnp.maximum(z_normed, 0.0)
    return a @ w2 + b2


if __name__ == "__main__":
    key = jax.random.PRNGKey(0)
    kx, kp, kx2, kp2 = jax.random.split(key, 4)

    # ---- assignment-scale shapes: batch=8, features=16, hidden=32, classes=8
    # (exercises the single-block fast path).
    B, F, H, O = 8, 16, 32, 8
    x = jax.random.normal(kx, (B, F), jnp.float32)
    params = init_params(kp, F, H, O)
    out = jax.block_until_ready(ffnn_forward(x, *params))
    ref = reference_forward(x, *params)
    assert out.shape == (B, O)
    assert bool(jnp.all(jnp.isfinite(out)))
    # bf16 matmul operands (f32 accumulation) vs pure-f32 reference.
    assert jnp.allclose(out, ref, atol=5e-2, rtol=5e-2), (
        float(jnp.max(jnp.abs(out - ref))))

    # ---- larger shape: exercises the two-call tiled path (grid over H and O).
    B2, F2, H2, O2 = 16, 96, 640, 384
    x2 = jax.random.normal(kx2, (B2, F2), jnp.float32)
    params2 = init_params(kp2, F2, H2, O2)
    out2 = jax.block_until_ready(ffnn_forward(x2, *params2))
    ref2 = reference_forward(x2, *params2)
    assert out2.shape == (B2, O2)
    assert bool(jnp.all(jnp.isfinite(out2)))
    # Looser tolerance: bf16 operand quantization accumulated over H=640 terms
    # vs a pure-f32 reference.
    assert jnp.allclose(out2, ref2, atol=1e-1, rtol=1e-1), (
        float(jnp.max(jnp.abs(out2 - ref2))))

    print("KERNEL_OK")
</pallas_src>

<mosaic_0001>
module attributes {stable_mosaic.version = 11 : i64} {
  func.func @_ffnn_small_kernel(%arg0: memref<8x128xbf16, #tpu.memory_space<vmem>>, %arg1: memref<128x128xbf16, #tpu.memory_space<vmem>>, %arg2: memref<1x128xf32, #tpu.memory_space<vmem>>, %arg3: memref<1x128xf32, #tpu.memory_space<vmem>>, %arg4: memref<1x128xf32, #tpu.memory_space<vmem>>, %arg5: memref<128x128xbf16, #tpu.memory_space<vmem>>, %arg6: memref<1x128xf32, #tpu.memory_space<vmem>>, %arg7: memref<8x128xf32, #tpu.memory_space<vmem>>) attributes {dimension_semantics = [], scalar_prefetch = 0 : i64, scratch_operands = 0 : i64, tpu.core_type = #tpu.core_type<tc>} {
    %c0 = arith.constant 0 : index
    %c0_0 = arith.constant 0 : index
    %0 = vector.load %arg0[%c0, %c0_0] : memref<8x128xbf16, #tpu.memory_space<vmem>>, vector<8x128xbf16>
    %c0_1 = arith.constant 0 : index
    %c0_2 = arith.constant 0 : index
    %1 = vector.load %arg1[%c0_1, %c0_2] : memref<128x128xbf16, #tpu.memory_space<vmem>>, vector<128x128xbf16>
    %cst = arith.constant dense<0.000000e+00> : vector<8x128xf32>
    %2 = tpu.matmul %0, %1, %cst {dimension_numbers = #tpu.dot_dimension_numbers<[1], [0], [0], [1], [0, 0, 1, 1], [], []>} : vector<8x128xbf16>, vector<128x128xbf16>, vector<8x128xf32> -> vector<8x128xf32>
    %c0_3 = arith.constant 0 : index
    %c0_4 = arith.constant 0 : index
    %3 = vector.load %arg2[%c0_3, %c0_4] : memref<1x128xf32, #tpu.memory_space<vmem>>, vector<1x128xf32>
    %4 = vector.broadcast %3 : vector<1x128xf32> to vector<8x128xf32>
    %5 = arith.addf %2, %4 : vector<8x128xf32>
    %cst_5 = arith.constant dense<0.000000e+00> : vector<128xf32>
    %6 = vector.multi_reduction <add>, %5, %cst_5 [0] : vector<8x128xf32> to vector<128xf32>
    %7 = vector.shape_cast %6 : vector<128xf32> to vector<1x128xf32>
    %cst_6 = arith.constant 8.000000e+00 : f32
    %8 = vector.broadcast %cst_6 : f32 to vector<1x128xf32>
    %9 = arith.divf %7, %8 : vector<1x128xf32>
    %10 = vector.broadcast %9 : vector<1x128xf32> to vector<8x128xf32>
    %11 = arith.subf %5, %10 : vector<8x128xf32>
    %12 = arith.mulf %11, %11 : vector<8x128xf32>
    %cst_7 = arith.constant dense<0.000000e+00> : vector<128xf32>
    %13 = vector.multi_reduction <add>, %12, %cst_7 [0] : vector<8x128xf32> to vector<128xf32>
    %14 = vector.shape_cast %13 : vector<128xf32> to vector<1x128xf32>
    %cst_8 = arith.constant 8.000000e+00 : f32
    %15 = vector.broadcast %cst_8 : f32 to vector<1x128xf32>
    %16 = arith.divf %14, %15 : vector<1x128xf32>
    %17 = vector.broadcast %9 : vector<1x128xf32> to vector<8x128xf32>
    %18 = arith.subf %5, %17 : vector<8x128xf32>
    %cst_9 = arith.constant 9.99999974E-6 : f32
    %19 = vector.broadcast %cst_9 : f32 to vector<1x128xf32>
    %20 = arith.addf %16, %19 : vector<1x128xf32>
    %21 = math.rsqrt %20 : vector<1x128xf32>
    %22 = vector.broadcast %21 : vector<1x128xf32> to vector<8x128xf32>
    %23 = arith.mulf %18, %22 : vector<8x128xf32>
    %c0_10 = arith.constant 0 : index
    %c0_11 = arith.constant 0 : index
    %24 = vector.load %arg3[%c0_10, %c0_11] : memref<1x128xf32, #tpu.memory_space<vmem>>, vector<1x128xf32>
    %25 = vector.broadcast %24 : vector<1x128xf32> to vector<8x128xf32>
    %26 = arith.mulf %23, %25 : vector<8x128xf32>
    %c0_12 = arith.constant 0 : index
    %c0_13 = arith.constant 0 : index
    %27 = vector.load %arg4[%c0_12, %c0_13] : memref<1x128xf32, #tpu.memory_space<vmem>>, vector<1x128xf32>
    %28 = vector.broadcast %27 : vector<1x128xf32> to vector<8x128xf32>
    %29 = arith.addf %26, %28 : vector<8x128xf32>
    %cst_14 = arith.constant 0.000000e+00 : f32
    %30 = vector.broadcast %cst_14 : f32 to vector<8x128xf32>
    %31 = arith.maximumf %29, %30 : vector<8x128xf32>
    %32 = arith.truncf %31 : vector<8x128xf32> to vector<8x128xbf16>
    %c0_15 = arith.constant 0 : index
    %c0_16 = arith.constant 0 : index
    %33 = vector.load %arg5[%c0_15, %c0_16] : memref<128x128xbf16, #tpu.memory_space<vmem>>, vector<128x128xbf16>
    %cst_17 = arith.constant dense<0.000000e+00> : vector<8x128xf32>
    %34 = tpu.matmul %32, %33, %cst_17 {dimension_numbers = #tpu.dot_dimension_numbers<[1], [0], [0], [1], [0, 0, 1, 1], [], []>} : vector<8x128xbf16>, vector<128x128xbf16>, vector<8x128xf32> -> vector<8x128xf32>
    %c0_18 = arith.constant 0 : index
    %c0_19 = arith.constant 0 : index
    %35 = vector.load %arg6[%c0_18, %c0_19] : memref<1x128xf32, #tpu.memory_space<vmem>>, vector<1x128xf32>
    %36 = vector.broadcast %35 : vector<1x128xf32> to vector<8x128xf32>
    %37 = arith.addf %34, %36 : vector<8x128xf32>
    %c0_20 = arith.constant 0 : index
    %c0_21 = arith.constant 0 : index
    %38 = vector.load %arg7[%c0_20, %c0_21] : memref<8x128xf32, #tpu.memory_space<vmem>>, vector<8x128xf32>
    tpu.vector_store %arg7[%c0_20, %c0_21], %37 {strides = array<i32>} : memref<8x128xf32, #tpu.memory_space<vmem>>, vector<8x128xf32>,
    return
  }
}

</mosaic_0001>

<bundles_post_ra>
// kernel: tpu_custom_call.1
= control target key start
LH: loop header
LB: loop body
LE: loop exit
PB: predicated region body
PF: predicated region fallthrough
CT: control target
= control target key end

     0   :  { %12 = vsyncpa [#allocation3], 0  ;;  %s607_s0 = inlined_call_operand.hbm [shape: bf16[8,128], index: 0, kind: input, shape index: {}]   ;;  %s608_s1 = inlined_call_operand.hbm [shape: bf16[128,128], index: 1, kind: input, shape index: {}]   ;;  %s609_s2 = inlined_call_operand.vmem [shape: f32[1,128], index: 2, kind: input, shape index: {}]   ;;  %s610_s3 = inlined_call_operand.vmem [shape: f32[1,128], index: 3, kind: input, shape index: {}]   ;;  %s611_s4 = inlined_call_operand.vmem [shape: f32[1,128], index: 4, kind: input, shape index: {}]   ;;  %s612_s5 = inlined_call_operand.hbm [shape: bf16[128,128], index: 5, kind: input, shape index: {}]   ;;  %s613_s6 = inlined_call_operand.vmem [shape: f32[1,128], index: 6, kind: input, shape index: {}]   ;;  %s614_s7 = inlined_call_operand.hbm [shape: f32[8,128], index: 7, kind: output, shape index: {}]  }
   0x1   :  { %13 = vsyncpa [#allocation6], 0 }
   0x2   :  { %14 = vsyncpa [#allocation4], 0  ;;  %s535_s24 = smov [#allocation5]  }
   0x3   :  { %s30_s25 = sshll.u32 %s535_s24, 4  ;;  %s31_s25 = int_to_ptr.vmem [resolvable:$true] %s30_s25 }
   0x4   :  { %s457_s26 = scalar_lea.vmem %s31_s25, 1024  ;;  %p462_p1 = scmp.lt.s32.totalorder %s31_s25, %s31_s25 }
   0x5   :  { %p458_p0 = scmp.ne.s32.totalorder %s31_s25, %s457_s26  ;;  %p463_p2 = scmp.lt.s32.totalorder %s457_s26, %s457_s26 }
   0x7   :  { %p464_p3 = por %p463_p2, %p462_p1 }
   0x9   :  { %p465_p4 = pnand %p464_p3, %p458_p0 }
   0xb   :  { %468 = shalt.err (!%p465_p4)
}
   0xc   :  { %s536_s27 = smov 64   ;;  %s537_s28 = smov 4  }
   0xd   :  { %36 = dma.hbm_to_vmem [thread:$0]  %s608_s1, 1024, %s31_s25, [#allocation6], %s536_s27, %s536_s27, %s537_s28  }
   0xe   :  { %s538_s8 = smov [#allocation2]   ;;  %s539_s10 = smov [#allocation7]  }
   0xf   :  { %s21_s9 = sshll.u32 %s538_s8, 4  ;;  %s48_s11 = sshll.u32 %s539_s10, 4  ;;  %s22_s9 = int_to_ptr.vmem [resolvable:$true] %s21_s9  ;;  %s49_s11 = int_to_ptr.vmem [resolvable:$true] %s48_s11 }
  0x10   :  { %s477_s12 = scalar_lea.vmem %s22_s9, 64  ;;  %p482_p6 = scmp.lt.s32.totalorder %s22_s9, %s22_s9 }
  0x11   :  { %p478_p5 = scmp.ne.s32.totalorder %s22_s9, %s477_s12  ;;  %p483_p7 = scmp.lt.s32.totalorder %s477_s12, %s477_s12 }
  0x13   :  { %p484_p8 = por %p483_p7, %p482_p6 }
  0x15   :  { %p485_p9 = pnand %p484_p8, %p478_p5 }
  0x17   :  { %488 = shalt.err (!%p485_p9)
}
  0x18   :  { %24 = dma.hbm_to_vmem [thread:$0]  %s607_s0, 64, %s22_s9, [#allocation3]  }
  0x19   :  { %s497_s15 = scalar_lea.vmem %s49_s11, 1024  ;;  %p502_p11 = scmp.lt.s32.totalorder %s49_s11, %s49_s11 }
  0x1a   :  { %p498_p10 = scmp.ne.s32.totalorder %s49_s11, %s497_s15  ;;  %p503_p12 = scmp.lt.s32.totalorder %s497_s15, %s497_s15 }
  0x1c   :  { %p504_p13 = por %p503_p12, %p502_p11 }
  0x1e   :  { %p505_p0 = pnand %p504_p13, %p498_p10 }
  0x20   :  { %508 = shalt.err (!%p505_p0)
}
  0x21   :  { %54 = dma.hbm_to_vmem [thread:$0]  %s612_s5, 1024, %s49_s11, [#allocation6], %s536_s27, %s536_s27, %s537_s28  }
  0x22   :  { %529 = dma.done.wait [#allocation3], 64  }
  0x23   :  { %530 = vsyncadd [#allocation3], 4294967232 }
  0x24   :  { %531 = dma.done.wait [#allocation6], 2048  }
  0x25   :  { %532 = vsyncadd [#allocation6], 4294965248  ;;  %v540_v0 = vmov 0.0   ;;  %vm541_vm0 = vmmov 0   ;;  %v431_v1 = vld [vmem:[#allocation5 + $0x38] sm:$0xff]   ;;  %v432_v2 = vld [vmem:[#allocation5 + $0x30] sm:$0xff]  }
  0x26   :  { %383 = vmatprep.subr.bf16.mxu0 %v540_v0  ;;  %399 = vmatprep.mubr.msk.bf16.mxu0 %vm541_vm0, %v540_v0  ;;  %v433_v3 = vld [vmem:[#allocation5 + $0x28] sm:$0xff]   ;;  %v434_v4 = vld [vmem:[#allocation5 + $0x20] sm:$0xff]   ;;  %v435_v5 = vld [vmem:[#allocation5 + $0x18] sm:$0xff]   ;;  %s542_s22 = smov [#allocation8]  }
  0x27   :  { %403 = vmatprep.subr.bf16.mxu1 %v540_v0  ;;  %419 = vmatprep.mubr.msk.bf16.mxu1 %vm541_vm0, %v540_v0  ;;  %v436_v6 = vld [vmem:[#allocation5 + $0x10] sm:$0xff]   ;;  %v437_v7 = vld [vmem:[#allocation5 + $0x8] sm:$0xff]   ;;  %v438_v8 = vld [vmem:[#allocation5] sm:$0xff]   ;;  %s335_s23 = sshll.u32 %s542_s22, 4  ;;  %s336_s23 = int_to_ptr.vmem [resolvable:$true] %s335_s23 }
  0x28   :  { %384 = vmatpush3.bf16.msra.mxu0 %v431_v1  ;;  %v67_v9 = vld [vmem:[#allocation2] sm:$0xf]  ;;  %v440_v11 = vld [vmem:[#allocation7 + $0x30] sm:$0xff]   ;;  %v441_v12 = vld [vmem:[#allocation7 + $0x28] sm:$0xff]   ;;  %p514_p2 = scmp.lt.s32.totalorder %s336_s23, %s336_s23 }
  0x29   :  { %385 = vmatprep.subr.bf16.mxu0 %v540_v0  ;;  %v439_v10 = vld [vmem:[#allocation7 + $0x38] sm:$0xff]   ;;  %v442_v13 = vld [vmem:[#allocation7 + $0x20] sm:$0xff]   ;;  %v444_v15 = vld [vmem:[#allocation7 + $0x10] sm:$0xff]  }
  0x2a   :  { %404 = vmatpush3.bf16.msra.mxu1 %v439_v10  ;;  %v443_v14 = vld [vmem:[#allocation7 + $0x18] sm:$0xff]   ;;  %v445_v16 = vld [vmem:[#allocation7 + $0x8] sm:$0xff]   ;;  %v446_v17 = vld [vmem:[#allocation7] sm:$0xff]  }
  0x2b   :  { %405 = vmatprep.subr.bf16.mxu1 %v540_v0  ;;  %v345_v18 = vld [vmem:[%s609_s2] ss:$0 sm:$0xff] }
  0x2c   :  { %386 = vmatpush3.bf16.msra.mxu0 %v432_v2  ;;  %v354_v42 = vld [vmem:[%s610_s3] ss:$0 sm:$0xff]  ;;  %s509_s3 = scalar_lea.vmem %s336_s23, 128 }
  0x2d   :  { %387 = vmatprep.subr.bf16.mxu0 %v540_v0  ;;  %v355_v44 = vld [vmem:[%s611_s4] ss:$0 sm:$0xff]  ;;  %p510_p1 = scmp.ne.s32.totalorder %s336_s23, %s509_s3  ;;  %p515_p3 = scmp.lt.s32.totalorder %s509_s3, %s509_s3 }
  0x2e   :  { %406 = vmatpush3.bf16.msra.mxu1 %v440_v11  ;;  %v356_v49 = vld [vmem:[%s613_s6] ss:$0 sm:$0xff] }
  0x2f   :  { %407 = vmatprep.subr.bf16.mxu1 %v540_v0  ;;  %p516_p4 = por %p515_p3, %p514_p2 }
  0x30   :  { %388 = vmatpush3.bf16.msra.mxu0 %v433_v3 }
  0x31   :  { %389 = vmatprep.subr.bf16.mxu0 %v540_v0  ;;  %p517_p5 = pnand %p516_p4, %p510_p1 }
  0x32   :  { %408 = vmatpush3.bf16.msra.mxu1 %v441_v12 }
  0x33   :  { %409 = vmatprep.subr.bf16.mxu1 %v540_v0 }
  0x34   :  { %390 = vmatpush3.bf16.msra.mxu0 %v434_v4 }
  0x35   :  { %391 = vmatprep.subr.bf16.mxu0 %v540_v0 }
  0x36   :  { %410 = vmatpush3.bf16.msra.mxu1 %v442_v13 }
  0x37   :  { %411 = vmatprep.subr.bf16.mxu1 %v540_v0 }
  0x38   :  { %392 = vmatpush3.bf16.msra.mxu0 %v435_v5 }
  0x39   :  { %393 = vmatprep.subr.bf16.mxu0 %v540_v0 }
  0x3a   :  { %412 = vmatpush3.bf16.msra.mxu1 %v443_v14 }
  0x3b   :  { %413 = vmatprep.subr.bf16.mxu1 %v540_v0 }
  0x3c   :  { %394 = vmatpush3.bf16.msra.mxu0 %v436_v6 }
  0x3d   :  { %395 = vmatprep.subr.bf16.mxu0 %v540_v0 }
  0x3e   :  { %414 = vmatpush3.bf16.msra.mxu1 %v444_v15 }
  0x3f   :  { %415 = vmatprep.subr.bf16.mxu1 %v540_v0 }
  0x40   :  { %396 = vmatpush3.bf16.msra.mxu0 %v437_v7 }
  0x41   :  { %397 = vmatprep.subr.bf16.mxu0 %v540_v0 }
  0x42   :  { %416 = vmatpush3.bf16.msra.mxu1 %v445_v16 }
  0x43   :  { %417 = vmatprep.subr.bf16.mxu1 %v540_v0 }
  0x44   :  { %398 = vmatpush3.bf16.msra.mxu0 %v438_v8 }
  0x46   :  { %418 = vmatpush3.bf16.msra.mxu1 %v446_v17 }
  0x47   :  { %400 = vmatmul.mubr.bf16.vlgmr.msra.gmra.mxu0 %v67_v9 }
 0x107   :  { %v173_v19 = vpop.f32.mrf.mxu0 }
 0x108   :  { %v174_v20 = vadd.f32 %v345_v18, %v173_v19 }
 0x109   :  { %v401_v21 = vpop.f32.mrf.mxu0 }
 0x10a   :  { %v179_v22 = vrot.slane %v174_v20, 4 }
 0x10b   :  { %v176_v23 = vpop.f32.mrf.mxu0 }
 0x10c   :  { %v180_v24 = vadd.f32 %v179_v22, %v174_v20 }
 0x10d   :  { %v402_v25 = vpop.f32.mrf.mxu0 }
 0x10e   :  { %v181_v26 = vrot.slane %v180_v24, 2 }
 0x110   :  { %v182_v27 = vadd.f32 %v181_v26, %v180_v24 }
 0x112   :  { %v183_v28 = vrot.slane %v182_v27, 1 }
 0x114   :  { %v184_v29 = vadd.f32 %v183_v28, %v182_v27 }
 0x116   :  { %v186_v30 = vmul.f32 0.125, %v184_v29 }
 0x118   :  { %v187_v31 = vsub.f32 %v174_v20, %v186_v30 }
 0x11a   :  { %v188_v32 = vmul.f32 %v187_v31, %v187_v31 }
 0x11c   :  { %v189_v33 = vrot.slane %v188_v32, 4 }
 0x11e   :  { %v190_v34 = vadd.f32 %v189_v33, %v188_v32 }
 0x120   :  { %v191_v35 = vrot.slane %v190_v34, 2 }
 0x122   :  { %v192_v36 = vadd.f32 %v191_v35, %v190_v34 }
 0x124   :  { %v193_v37 = vrot.slane %v192_v36, 1 }
 0x126   :  { %v194_v38 = vadd.f32 %v193_v37, %v192_v36 }
 0x128   :  { %v195_v39 = vmul.f32 0.125, %v194_v38 }
 0x12a   :  { %v196_v40 = vadd.f32 1e-05, %v195_v39 }
 0x12c   :  { %447 = vrsqrt.f32 %v196_v40 }
 0x139   :  { %v448_v41 = vpop.eup %447 }
 0x13a   :  { %v198_v43 = vmul.f32 %v448_v41, %v187_v31 }
 0x13c   :  { %v206_v45 = vmul.f32 %v354_v42, %v198_v43 }
 0x13e   :  { %v214_v46 = vadd.f32 %v355_v44, %v206_v45 }
 0x140   :  { %v215_v47 = vmax.f32 %v214_v46, 0.0 }
 0x142   :  { %v216_v48 = vpack.c.bf16 %v215_v47, %v215_v47 }
 0x144   :  { %420 = vmatmul.mubr.bf16.vlgmr.msra.gmra.mxu1 %v216_v48 }
 0x204   :  { %v322_v50 = vpop.f32.mrf.mxu1 }
 0x205   :  { %v323_v51 = vadd.f32 %v356_v49, %v322_v50 }
 0x206   :  { %v421_v52 = vpop.f32.mrf.mxu1 }
 0x207   :  { %328 = vst [vmem:[#allocation8] sm:$0xff] %v323_v51 }
 0x208   :  { %v325_v53 = vpop.f32.mrf.mxu1 }
 0x209   :  { %520 = shalt.err (!%p517_p5)
}
 0x20a   :  { %338 = dma.vmem_to_hbm [thread:$0]  %s336_s23, 128, %s614_s7, [#allocation4]   ;;  %v422_v54 = vpop.f32.mrf.mxu1 }
 0x20b   :  { %533 = dma.done.wait [#allocation4], 128  }
 0x20c   :  { %534 = vsyncadd [#allocation4], 4294967168 }
 0x20d   :  { %342 = vsyncpa [#allocation3], 1 }
 0x20e   :  { %343 = vsyncpa [#allocation6], 1 }
 0x20f   :  { %344 = vsyncpa [#allocation4], 1 }

</bundles_post_ra>
